<compile_context>
chip_gen: v7x
topology: tpu7x:2x2x1
jax: 0.10.0
libtpu: 0.0.40
codegen_flags: <defaults>
</compile_context>

<pallas_src>
import functools

import jax
import jax.numpy as jnp
from jax.experimental import pallas as pl
from jax.experimental.pallas import tpu as pltpu

# Layer sizes of the PyTorch module.
D_IN, D_H1, D_H2, D_H3, D_OUT = 24, 30, 15, 10, 2


def mlp_kernel(x_ref,
               w1_ref, b1_ref,
               w2_ref, b2_ref,
               w3_ref, b3_ref,
               w4_ref, b4_ref,
               o_ref):
    # Feature-major: batch lives on the 128-lane axis. MXU sees N = TB >= 128.
    x = x_ref[...]                                                    # (24, TB)
    h = jnp.dot(w1_ref[...], x, preferred_element_type=jnp.float32)   # (30, TB)
    h = jnp.maximum(h + b1_ref[...], 0.0)                             # ReLU
    h = jnp.dot(w2_ref[...], h, preferred_element_type=jnp.float32)   # (15, TB)
    h = jnp.maximum(h + b2_ref[...], 0.0)                             # ReLU
    h = jnp.dot(w3_ref[...], h, preferred_element_type=jnp.float32)   # (10, TB)
    h = jax.nn.sigmoid(h + b3_ref[...])                               # Sigmoid
    h = jnp.dot(w4_ref[...], h, preferred_element_type=jnp.float32)   # (2, TB)
    o_ref[...] = (h + b4_ref[...]).astype(o_ref.dtype)


def _round_up(n, m):
    return ((n + m - 1) // m) * m


@functools.partial(jax.jit, static_argnames=("tb",))
def mlp_forward(x, params, *, tb=512):
    """x: (B, 24) float32 (PyTorch NC layout). Returns (B, 2) float32."""
    (w1, b1), (w2, b2), (w3, b3), (w4, b4) = params
    B = x.shape[0]

    # Batch tile: at least 128 lanes (unmasked vst), 512 for big batches.
    # Per-tile VMEM: x 24*TB*4 + out 2*TB*4 + weights ~5 KB  -> tiny on all gens
    # (well under v7x's 32 MiB default scoped VMEM).
    TB = min(tb, _round_up(B, 128))
    B_pad = _round_up(B, TB)
    grid = (B_pad // TB,)

    # Transpose/pad once in the wrapper: feature-major (24, B_pad).
    xt = jnp.pad(x.T, ((0, 0), (0, B_pad - B)))

    def resident(a):  # weights/biases: whole array, same block every grid step
        return pl.BlockSpec(a.shape, lambda i: (0, 0))

    out_t = pl.pallas_call(
        mlp_kernel,
        out_shape=jax.ShapeDtypeStruct((D_OUT, B_pad), jnp.float32),
        grid=grid,
        in_specs=[
            pl.BlockSpec((D_IN, TB), lambda i: (0, i)),   # x tile, batch on lanes
            resident(w1), resident(b1),
            resident(w2), resident(b2),
            resident(w3), resident(b3),
            resident(w4), resident(b4),
        ],
        out_specs=pl.BlockSpec((D_OUT, TB), lambda i: (0, i)),
        compiler_params=pltpu.CompilerParams(
            dimension_semantics=("parallel",),            # megacore split on v7x
        ),
    )(xt, w1, b1, w2, b2, w3, b3, w4, b4)

    return out_t[:, :B].T                                  # back to (B, 2)


def init_linear(key, fan_in, fan_out):
    # PyTorch default init: U(-1/sqrt(fan_in), 1/sqrt(fan_in)) for weight & bias.
    kw, kb = jax.random.split(key)
    bound = 1.0 / jnp.sqrt(fan_in)
    # Stored as (out, in), same as torch.nn.Linear.weight; kernel does W @ x.
    w = jax.random.uniform(kw, (fan_out, fan_in), jnp.float32, -bound, bound)
    b = jax.random.uniform(kb, (fan_out, 1), jnp.float32, -bound, bound)
    return w, b


def reference_forward(x, params):
    (w1, b1), (w2, b2), (w3, b3), (w4, b4) = params
    h = jnp.maximum(x @ w1.T + b1.T, 0.0)
    h = jnp.maximum(h @ w2.T + b2.T, 0.0)
    h = jax.nn.sigmoid(h @ w3.T + b3.T)
    return h @ w4.T + b4.T


if __name__ == "__main__":
    key = jax.random.PRNGKey(0)
    k_x, k1, k2, k3, k4 = jax.random.split(key, 5)

    params = (
        init_linear(k1, D_IN, D_H1),
        init_linear(k2, D_H1, D_H2),
        init_linear(k3, D_H2, D_H3),
        init_linear(k4, D_H3, D_OUT),
    )

    # Tolerance covers TPU default matmul precision (bf16 operand rounding)
    # differences between the Mosaic kernel path and the XLA reference path.
    ATOL = RTOL = 5e-3

    # Batched case: exercises the grid (2 steps of TB=512) + resident weights.
    B = 1024
    x = jax.random.normal(k_x, (B, D_IN), jnp.float32)
    out = jax.block_until_ready(mlp_forward(x, params))
    ref = reference_forward(x, params)
    assert out.shape == (B, D_OUT), out.shape
    assert jnp.allclose(out, ref, atol=ATOL, rtol=RTOL), "mismatch vs reference (B=1024)"

    # Tiny-batch (online-inference) case: exercises the padding path.
    x_small = jax.random.normal(k_x, (8, D_IN), jnp.float32)
    out_small = jax.block_until_ready(mlp_forward(x_small, params))
    ref_small = reference_forward(x_small, params)
    assert out_small.shape == (8, D_OUT), out_small.shape
    assert jnp.allclose(out_small, ref_small, atol=ATOL, rtol=RTOL), "mismatch vs reference (B=8)"

    print("KERNEL_OK")
</pallas_src>

<mosaic_0001>
module attributes {stable_mosaic.version = 11 : i64} {
  func.func @mlp_kernel(%arg0: i32, %arg1: memref<24x512xf32, #tpu.memory_space<vmem>>, %arg2: memref<30x24xf32, #tpu.memory_space<vmem>>, %arg3: memref<30x1xf32, #tpu.memory_space<vmem>>, %arg4: memref<15x30xf32, #tpu.memory_space<vmem>>, %arg5: memref<15x1xf32, #tpu.memory_space<vmem>>, %arg6: memref<10x15xf32, #tpu.memory_space<vmem>>, %arg7: memref<10x1xf32, #tpu.memory_space<vmem>>, %arg8: memref<2x10xf32, #tpu.memory_space<vmem>>, %arg9: memref<2x1xf32, #tpu.memory_space<vmem>>, %arg10: memref<2x512xf32, #tpu.memory_space<vmem>>) attributes {dimension_semantics = [#tpu.dimension_semantics<parallel>], iteration_bounds = array<i64: 2>, scalar_prefetch = 0 : i64, scratch_operands = 0 : i64, tpu.core_type = #tpu.core_type<tc>, window_params = [{transform_indices = @transform_0, window_bounds = array<i64: 24, 512>}, {pipeline_mode = #tpu.pipeline_mode<synchronous>, transform_indices = @transform_1, window_bounds = array<i64: 30, 24>}, {pipeline_mode = #tpu.pipeline_mode<synchronous>, transform_indices = @transform_2, window_bounds = array<i64: 30, 1>}, {pipeline_mode = #tpu.pipeline_mode<synchronous>, transform_indices = @transform_3, window_bounds = array<i64: 15, 30>}, {pipeline_mode = #tpu.pipeline_mode<synchronous>, transform_indices = @transform_4, window_bounds = array<i64: 15, 1>}, {pipeline_mode = #tpu.pipeline_mode<synchronous>, transform_indices = @transform_5, window_bounds = array<i64: 10, 15>}, {pipeline_mode = #tpu.pipeline_mode<synchronous>, transform_indices = @transform_6, window_bounds = array<i64: 10, 1>}, {pipeline_mode = #tpu.pipeline_mode<synchronous>, transform_indices = @transform_7, window_bounds = array<i64: 2, 10>}, {pipeline_mode = #tpu.pipeline_mode<synchronous>, transform_indices = @transform_8, window_bounds = array<i64: 2, 1>}, {transform_indices = @transform_9, window_bounds = array<i64: 2, 512>}]} {
    %c0 = arith.constant 0 : index
    %c0_0 = arith.constant 0 : index
    %0 = vector.load %arg1[%c0, %c0_0] : memref<24x512xf32, #tpu.memory_space<vmem>>, vector<24x512xf32>
    %c0_1 = arith.constant 0 : index
    %c0_2 = arith.constant 0 : index
    %1 = vector.load %arg2[%c0_1, %c0_2] : memref<30x24xf32, #tpu.memory_space<vmem>>, vector<30x24xf32>
    %cst = arith.constant dense<0.000000e+00> : vector<30x512xf32>
    %2 = tpu.matmul %1, %0, %cst {dimension_numbers = #tpu.dot_dimension_numbers<[1], [0], [0], [1], [0, 0, 1, 1], [], []>} : vector<30x24xf32>, vector<24x512xf32>, vector<30x512xf32> -> vector<30x512xf32>
    %c0_3 = arith.constant 0 : index
    %c0_4 = arith.constant 0 : index
    %3 = vector.load %arg3[%c0_3, %c0_4] : memref<30x1xf32, #tpu.memory_space<vmem>>, vector<30x1xf32>
    %4 = vector.broadcast %3 : vector<30x1xf32> to vector<30x512xf32>
    %5 = arith.addf %2, %4 : vector<30x512xf32>
    %cst_5 = arith.constant 0.000000e+00 : f32
    %6 = vector.broadcast %cst_5 : f32 to vector<30x512xf32>
    %7 = arith.maximumf %5, %6 : vector<30x512xf32>
    %c0_6 = arith.constant 0 : index
    %c0_7 = arith.constant 0 : index
    %8 = vector.load %arg4[%c0_6, %c0_7] : memref<15x30xf32, #tpu.memory_space<vmem>>, vector<15x30xf32>
    %cst_8 = arith.constant dense<0.000000e+00> : vector<15x512xf32>
    %9 = tpu.matmul %8, %7, %cst_8 {dimension_numbers = #tpu.dot_dimension_numbers<[1], [0], [0], [1], [0, 0, 1, 1], [], []>} : vector<15x30xf32>, vector<30x512xf32>, vector<15x512xf32> -> vector<15x512xf32>
    %c0_9 = arith.constant 0 : index
    %c0_10 = arith.constant 0 : index
    %10 = vector.load %arg5[%c0_9, %c0_10] : memref<15x1xf32, #tpu.memory_space<vmem>>, vector<15x1xf32>
    %11 = vector.broadcast %10 : vector<15x1xf32> to vector<15x512xf32>
    %12 = arith.addf %9, %11 : vector<15x512xf32>
    %cst_11 = arith.constant 0.000000e+00 : f32
    %13 = vector.broadcast %cst_11 : f32 to vector<15x512xf32>
    %14 = arith.maximumf %12, %13 : vector<15x512xf32>
    %c0_12 = arith.constant 0 : index
    %c0_13 = arith.constant 0 : index
    %15 = vector.load %arg6[%c0_12, %c0_13] : memref<10x15xf32, #tpu.memory_space<vmem>>, vector<10x15xf32>
    %cst_14 = arith.constant dense<0.000000e+00> : vector<10x512xf32>
    %16 = tpu.matmul %15, %14, %cst_14 {dimension_numbers = #tpu.dot_dimension_numbers<[1], [0], [0], [1], [0, 0, 1, 1], [], []>} : vector<10x15xf32>, vector<15x512xf32>, vector<10x512xf32> -> vector<10x512xf32>
    %c0_15 = arith.constant 0 : index
    %c0_16 = arith.constant 0 : index
    %17 = vector.load %arg7[%c0_15, %c0_16] : memref<10x1xf32, #tpu.memory_space<vmem>>, vector<10x1xf32>
    %18 = vector.broadcast %17 : vector<10x1xf32> to vector<10x512xf32>
    %19 = arith.addf %16, %18 : vector<10x512xf32>
    %20 = arith.negf %19 : vector<10x512xf32>
    %21 = math.exp %20 : vector<10x512xf32>
    %cst_17 = arith.constant 1.000000e+00 : f32
    %22 = vector.broadcast %cst_17 : f32 to vector<10x512xf32>
    %23 = arith.addf %22, %21 : vector<10x512xf32>
    %24 = arith.divf %22, %23 : vector<10x512xf32>
    %c0_18 = arith.constant 0 : index
    %c0_19 = arith.constant 0 : index
    %25 = vector.load %arg8[%c0_18, %c0_19] : memref<2x10xf32, #tpu.memory_space<vmem>>, vector<2x10xf32>
    %cst_20 = arith.constant dense<0.000000e+00> : vector<2x512xf32>
    %26 = tpu.matmul %25, %24, %cst_20 {dimension_numbers = #tpu.dot_dimension_numbers<[1], [0], [0], [1], [0, 0, 1, 1], [], []>} : vector<2x10xf32>, vector<10x512xf32>, vector<2x512xf32> -> vector<2x512xf32>
    %c0_21 = arith.constant 0 : index
    %c0_22 = arith.constant 0 : index
    %27 = vector.load %arg9[%c0_21, %c0_22] : memref<2x1xf32, #tpu.memory_space<vmem>>, vector<2x1xf32>
    %28 = vector.broadcast %27 : vector<2x1xf32> to vector<2x512xf32>
    %29 = arith.addf %26, %28 : vector<2x512xf32>
    %c0_23 = arith.constant 0 : index
    %c0_24 = arith.constant 0 : index
    %30 = vector.load %arg10[%c0_23, %c0_24] : memref<2x512xf32, #tpu.memory_space<vmem>>, vector<2x512xf32>
    tpu.vector_store %arg10[%c0_23, %c0_24], %29 {strides = array<i32>} : memref<2x512xf32, #tpu.memory_space<vmem>>, vector<2x512xf32>,
    return
  }
  func.func @transform_0(%arg0: i32) -> (i32, i32) {
    %c0_i32 = arith.constant 0 : i32
    %c0_i32_0 = arith.constant 0 : i32
    return %c0_i32, %arg0 : i32, i32
  }
  func.func @transform_1(%arg0: i32) -> (i32, i32) {
    %c0_i32 = arith.constant 0 : i32
    %c0_i32_0 = arith.constant 0 : i32
    %c0_i32_1 = arith.constant 0 : i32
    return %c0_i32, %c0_i32_0 : i32, i32
  }
  func.func @transform_2(%arg0: i32) -> (i32, i32) {
    %c0_i32 = arith.constant 0 : i32
    %c0_i32_0 = arith.constant 0 : i32
    %c0_i32_1 = arith.constant 0 : i32
    return %c0_i32, %c0_i32_0 : i32, i32
  }
  func.func @transform_3(%arg0: i32) -> (i32, i32) {
    %c0_i32 = arith.constant 0 : i32
    %c0_i32_0 = arith.constant 0 : i32
    %c0_i32_1 = arith.constant 0 : i32
    return %c0_i32, %c0_i32_0 : i32, i32
  }
  func.func @transform_4(%arg0: i32) -> (i32, i32) {
    %c0_i32 = arith.constant 0 : i32
    %c0_i32_0 = arith.constant 0 : i32
    %c0_i32_1 = arith.constant 0 : i32
    return %c0_i32, %c0_i32_0 : i32, i32
  }
  func.func @transform_5(%arg0: i32) -> (i32, i32) {
    %c0_i32 = arith.constant 0 : i32
    %c0_i32_0 = arith.constant 0 : i32
    %c0_i32_1 = arith.constant 0 : i32
    return %c0_i32, %c0_i32_0 : i32, i32
  }
  func.func @transform_6(%arg0: i32) -> (i32, i32) {
    %c0_i32 = arith.constant 0 : i32
    %c0_i32_0 = arith.constant 0 : i32
    %c0_i32_1 = arith.constant 0 : i32
    return %c0_i32, %c0_i32_0 : i32, i32
  }
  func.func @transform_7(%arg0: i32) -> (i32, i32) {
    %c0_i32 = arith.constant 0 : i32
    %c0_i32_0 = arith.constant 0 : i32
    %c0_i32_1 = arith.constant 0 : i32
    return %c0_i32, %c0_i32_0 : i32, i32
  }
  func.func @transform_8(%arg0: i32) -> (i32, i32) {
    %c0_i32 = arith.constant 0 : i32
    %c0_i32_0 = arith.constant 0 : i32
    %c0_i32_1 = arith.constant 0 : i32
    return %c0_i32, %c0_i32_0 : i32, i32
  }
  func.func @transform_9(%arg0: i32) -> (i32, i32) {
    %c0_i32 = arith.constant 0 : i32
    %c0_i32_0 = arith.constant 0 : i32
    return %c0_i32, %arg0 : i32, i32
  }
}

</mosaic_0001>

<bundles_post_ra>
// kernel: mlp_forward.1
= control target key start
LH: loop header
LB: loop body
LE: loop exit
PB: predicated region body
PF: predicated region fallthrough
CT: control target
= control target key end

     0   :  { %14 = vsyncpa [#allocation3], 0  ;;  %s1910_s0 = inlined_call_operand.hbm [shape: f32[24,1024], index: 0, kind: input, shape index: {}]   ;;  %s1911_s1 = inlined_call_operand.vmem [shape: f32[30,24], index: 1, kind: input, shape index: {}]   ;;  %s1912_s2 = inlined_call_operand.vmem [shape: f32[30,1], index: 2, kind: input, shape index: {}]   ;;  %s1913_s3 = inlined_call_operand.vmem [shape: f32[15,30], index: 3, kind: input, shape index: {}]   ;;  %s1914_s4 = inlined_call_operand.vmem [shape: f32[15,1], index: 4, kind: input, shape index: {}]   ;;  %s1915_s5 = inlined_call_operand.vmem [shape: f32[10,15], index: 5, kind: input, shape index: {}]   ;;  %s1916_s6 = inlined_call_operand.vmem [shape: f32[10,1], index: 6, kind: input, shape index: {}]   ;;  %s1917_s7 = inlined_call_operand.vmem [shape: f32[2,10], index: 7, kind: input, shape index: {}]   ;;  %s1918_s8 = inlined_call_operand.vmem [shape: f32[2,1], index: 8, kind: input, shape index: {}]   ;;  %s1919_s9 = inlined_call_operand.hbm [shape: f32[2,1024], index: 9, kind: output, shape index: {}]  }
   0x1   :  { %16 = vsyncpa [#allocation3 + $0x1], 0 }
   0x2   :  { %17 = vsyncpa [#allocation4], 0 }
   0x3   :  { %19 = vsyncpa [#allocation4 + $0x1], 0  ;;  %s1656_s30 = smov 0   ;;  %s1658_s10 = smov 0  }
   0x4   :  { %s1660_s11 = smov 0   ;;  %s1662_s12 = smov 0  }
   0x5 LB: > { %s1677_s13 = sadd.s32 4294967295, %s1595_s12   ;;  %s1306_s14 = sadd.s32 4294967294, %s1595_s12   ;;  %s1595_s12 = sphi %s1662_s12, %s1934_s12   ;;  %s1591_s11 = sphi %s1660_s11, %s1933_s11   ;;  %s1587_s10 = sphi %s1658_s10, %s1932_s10   ;;  %s1583_s30 = sphi %s1656_s30, %s1931_s30  }
   0x6   : > { %s1681_s15 = sadd.s32 1, %s1595_s12   ;;  %s32_s16 = sadd.s32 1, %s1591_s11 }
   0x7   : > { %s29_s17 = ssub.s32 %s1595_s12, %s1681_s15  ;;  %p39_p0 = scmp.ne.s32.totalorder %s1591_s11, %s1587_s10 }
   0x8   : > { %p30_p1 = scmp.eq.s32.totalorder %s29_s17, 0  ;;  %p40_p2 = scmp.eq.s32.totalorder %s1595_s12, 0 }
   0x9   : > { %p45_p3 = scmp.ne.s32.totalorder %s1587_s10, %s1583_s30  ;;  %p46_p4 = scmp.eq.s32.totalorder %s1677_s13, 0 }
   0xa   : > { %s1693_s18 = scalar_select %p30_p1, %s1591_s11, %s32_s16  }
   0xb   : > { %p41_p5 = por %p40_p2, %p39_p0  ;;  %p1695_p6 = por %p46_p4, %p45_p3 }
   0xc   : > { %1921 = sst [smem:[#allocation8_spill]] %s1693_s18  ;;  %p237_p7 = scmp.eq.s32.totalorder %s1677_s13, 1 }
   0xd   : > { %p243_p8 = scmp.eq.s32.totalorder %s1306_s14, 1  ;;  %p1424_p10 = scmp.lt.s32.totalorder %s1595_s12, 2 }
   0xe   : > { %p1702_p11 = por %p237_p7, %p39_p0  ;;  %s287_s22 = sand.u32 1, %s1591_s11  }
   0xf   : > { %p1706_p12 = por %p243_p8, %p45_p3  ;;  %s1356_s23 = sshll.u32 %s1595_s12, 9 }
  0x10   : > { %s1923_s20 = scalar_select %p1702_p11, 1, 0 }
  0x11   : > { %s1924_s21 = scalar_select %p1706_p12, 1, 0 }
  0x12   : > { %s1410_s24 = smul.u32 96, %s287_s22  ;;  %s1715_s27 = scalar_lea.hbm %s1910_s0, %s1356_s23 }
  0x13   : > { %p1717_p13 = pnand %p1424_p10, %p41_p5  ;;  %s1724_s16 = scalar_lea.sflag [#allocation3], %s287_s22 }
  0x14   : > { %s291_s29 = scalar_lea.vmem [#allocation2], %s1410_s24  ;;  %s1499_s17 = scalar_lea.hbm %s1715_s27, 1536 }
  0x15   : > { %s298_s14 = sshll.u32 %s291_s29, 4  ;;  %p1500_p1 = scmp.ne.s32.totalorder %s1715_s27, %s1499_s17  ;;  %s1721_s14 = int_to_ptr.vmem [resolvable:$true] %s298_s14 }
  0x16   : > { %p1501_p2 = pneg %p1717_p13  ;;  %s1504_s26 = scalar_lea.hbm %s1910_s0, 3072 }
  0x17   : > { %p1505_p5 = scmp.lt.u32.totalorder %s1715_s27, %s1910_s0  ;;  %p1506_p7 = scmp.lt.u32.totalorder %s1504_s26, %s1499_s17 }
  0x18   : > { %p1502_p3 = pnand %p1501_p2, %p1500_p1  ;;  %p1508_p10 = scmp.lt.u32.totalorder %s1499_s17, %s1715_s27 }
  0x19   : > { %p1507_p8 = por %p1506_p7, %p1505_p5 }
  0x1a   : > { %p1503_p4 = pneg %p1502_p3 }
  0x1b   : > { %p1509_p9 = por %p1508_p10, %p1507_p8 }
  0x1d   : > { %p1510_p0 = pnand %p1509_p9, %p1503_p4 }
  0x1f   : > { %1513 = shalt.err (!%p1510_p0)
}
  0x20   : > { %s1514_s22 = scalar_lea.vmem %s1721_s14, 1536  ;;  %s1597_s29 = smov [#allocation2]  }
  0x21   : > { %p1515_p1 = scmp.ne.s32.totalorder %s1721_s14, %s1514_s22  ;;  %s1519_s23 = sshll.u32 %s1597_s29, 4  ;;  %s1520_s23 = int_to_ptr.vmem [resolvable:$false] %s1519_s23 }
  0x22   : > { %s1521_s18 = scalar_lea.vmem %s1520_s23, 3072  ;;  %p1522_p11 = scmp.lt.s32.totalorder %s1721_s14, %s1520_s23 }
  0x23   : > { %p1517_p3 = pnand %p1515_p1, %p1501_p2  ;;  %p1523_p5 = scmp.lt.s32.totalorder %s1521_s18, %s1514_s22 }
  0x25   : > { %p1518_p12 = pneg %p1517_p3  ;;  %p1524_p7 = por %p1523_p5, %p1522_p11 }
  0x27   : > { %p1525_p8 = pnand %p1524_p7, %p1518_p12 }
  0x29   : > { %1528 = shalt.err (!%p1525_p8)
}
  0x2a   : > { %s1598_s17 = smov 1024   ;;  %s1599_s25 = smov 512  }
  0x2b   : > { %s1600_s26 = smov 32   ;;  %p306_p9 = scmp.lt.s32.totalorder %s1595_s12, 3 }
  0x2c   : > { %1419 = dma.hbm_to_vmem [thread:$0]  (!%p1717_p13), %s1715_s27, 1536, %s1721_s14, %s1724_s16, %s1598_s17, %s1599_s25, %s1600_s26  }
  0x2d   : > { %p1926_p0 = scmp.ge.s32.totalorder %s1595_s12, 1 }
  0x2f   : > { %p307_p2 = pnand %p1926_p0, %p306_p9 }
  0x30   : > { %s1756_s24 = sand.u32 (!%p307_p2), 1, %s1587_s10  }
  0x31   : > { %310 = sbr.rel (%p307_p2) target bundleno = 1017 (0x3f9), region = 56  ;;  %s313_s29 = scalar_lea.sflag (!%p307_p2), [#allocation3], %s1756_s24 }
  0x32   : > { %s1411_s22 = smul.u32 (!%p307_p2), 96, %s1756_s24 }
  0x34   : > { %s1760_s23 = scalar_lea.vmem (!%p307_p2), [#allocation2], %s1411_s22 }
  0x38   : > { %1574 = dma.done.wait (%p1695_p6), %s313_s29, 1536  }
  0x39   : > { %1576 = vsyncadd (%p1695_p6), %s313_s29, 4294965760  ;;  %v1601_v0 = vmov 0.0   ;;  %v1602_v1 = vmov 0   ;;  %v354_v2 = vld [vmem:[%s1760_s23 + $0x8] sm:$0xff]  ;;  %v356_v4 = vld [vmem:[%s1760_s23 + $0x18] sm:$0xff]  ;;  %vm393_vm0 = vcmask 195584  }
  0x3a   : > { %470 = vmatprep.mubr.f32.mxu0 %v1601_v0  ;;  %559 = vmatprep.mubr.f32.mxu1 %v1601_v0  ;;  %v358_v3 = vld [vmem:[%s1760_s23 + $0x28] sm:$0xff]  ;;  %v360_v6 = vld [vmem:[%s1760_s23 + $0x38] sm:$0xff]  ;;  %v353_v7 = vld [vmem:[%s1760_s23] sm:$0xff]  ;;  %vm621_vm1 = vcmask 1045504   ;;  %vm1603_vm2 = vmmov 1   ;;  %vm614_vm4 = vcmask 244736  }
  0x3b   : > { %1465 = vset.pattern.permute.xlu0 %v1602_v1  ;;  %1466 = vset.pattern.permute.xlu1 %v1602_v1  ;;  %v1358_v5 = vpack.c.bf16 %v358_v3, %v354_v2  ;;  %v357_v8 = vld [vmem:[%s1760_s23 + $0x20] sm:$0xff]  ;;  %v1362_v9 = vpack.c.bf16 %v360_v6, %v356_v4  ;;  %v355_v11 = vld [vmem:[%s1760_s23 + $0x10] sm:$0xff]  ;;  %v362_v13 = vld [vmem:[%s1760_s23 + $0x48] sm:$0xff]  ;;  %vm817_vm5 = vcmask 1046528   ;;  %vm810_vm7 = vcmask 121856   ;;  %s1312_s19 = sshll.u32 %s1756_s24, 3 }
  0x3c   : > { %v1360_v10 = vpack.c.bf16 %v357_v8, %v353_v7  ;;  %v359_v12 = vld [vmem:[%s1760_s23 + $0x30] sm:$0xff]  ;;  %v364_v15 = vld [vmem:[%s1760_s23 + $0x58] sm:$0xff]  ;;  %v361_v16 = vld [vmem:[%s1760_s23 + $0x40] sm:$0xff]  ;;  %vm1043_vm8 = vcmask 1041408   ;;  %vm1039_vm10 = vcmask 80896   ;;  %s1357_s27 = sshll.u32 %s1677_s13, 7 }
  0x3d   : > { %1359 = vmatprep.subr.bf16.mxu0 %v1358_v5  ;;  %v1364_v14 = vpack.c.bf16 %v359_v12, %v355_v11  ;;  %1363 = vmatprep.subr.bf16.mxu1 %v1362_v9  ;;  %v369_v17 = vld [vmem:[%s1912_s2] sm:$0xff]  ;;  %v363_v18 = vld [vmem:[%s1760_s23 + $0x50] sm:$0xff]  ;;  %v370_v21 = vld [vmem:[%s1912_s2 + $0x8] sm:$0xff]  ;;  %s350_s28 = scalar_lea.vmem [#allocation5], %s1312_s19  ;;  %s1866_s17 = scalar_lea.hbm %s1919_s9, %s1357_s27 }
  0x3e   : > { %1361 = vmatpush1.bf16.msra.mxu0 %v1360_v10  ;;  %v365_v19 = vld [vmem:[%s1911_s1] sm:$0xff]  ;;  %375 = vperm.xlu0 %1465, %v369_v17   ;;  %v371_v20 = vld [vmem:[%s1912_s2 + $0x10] sm:$0xff]  ;;  %v372_v22 = vld [vmem:[%s1912_s2 + $0x18] sm:$0x3f]  ;;  %s1236_s14 = sshll.u32 %s350_s28, 4  ;;  %s1222_s25 = scalar_lea.sflag [#allocation4], %s1756_s24  ;;  %s1868_s14 = int_to_ptr.vmem [resolvable:$true] %s1236_s14 }
  0x3f   : > { %1365 = vmatpush1.bf16.msra.mxu1 %v1364_v14  ;;  %410 = vmatprep.subr.mxu0 %v362_v13  ;;  %v366_v23 = vld [vmem:[%s1911_s1 + $0x8] sm:$0xff]  ;;  %v602_v24 = vld [vmem:[%s1914_s4] sm:$0xff]  ;;  %v367_v26 = vld [vmem:[%s1911_s1 + $0x10] sm:$0xff]  ;;  %s1529_s26 = scalar_lea.vmem %s1868_s14, 128  ;;  %p1927_p11 = scmp.ne.s32.totalorder %s1923_s20, 0 }
  0x40   : > { %499 = vmatprep.subr.mxu1 %v364_v15  ;;  %385 = vperm.xlu1 %1466, %v371_v20   ;;  %v603_v25 = vld [vmem:[%s1914_s4 + $0x8] sm:$0x7f]  ;;  %v798_v27 = vld [vmem:[%s1916_s6] sm:$0xff]  ;;  %v368_v29 = vld [vmem:[%s1911_s1 + $0x18] sm:$0x3f]  ;;  %p1530_p6 = scmp.ne.s32.totalorder %s1868_s14, %s1529_s26  ;;  %s1605_s13 = smov [#allocation5]  }
  0x41   : > { %v799_v28 = vld [vmem:[%s1916_s6 + $0x8] sm:$0x3]  ;;  %v1033_v30 = vld [vmem:[%s1918_s8] sm:$0x3]  ;;  %vm1371_vm3 = vmpackc.low %vm621_vm1, %vm1603_vm2  ;;  %s1533_s22 = sshll.u32 %s1605_s13, 4  ;;  %s1534_s22 = int_to_ptr.vmem [resolvable:$false] %s1533_s22 }
  0x42   : > { %411 = vmatpush1.msra.mxu0 %v361_v16  ;;  %380 = vperm.xlu0 %1465, %v370_v21   ;;  %vm1387_vm6 = vmpackc.low %vm817_vm5, %vm1603_vm2  ;;  %p1531_p12 = pnand %p1530_p6, %p1927_p11  ;;  %s1535_s29 = scalar_lea.vmem %s1534_s22, 256 }
  0x43   : > { %500 = vmatpush1.msra.mxu1 %v363_v18  ;;  %1313 = vmatmul.mubr.msk.f32.vlgmr.msra.gmra.mrb[0].mxu0 %vm393_vm0, %v365_v19  ;;  %vm1399_vm9 = vmpackc.low %vm1043_vm8, %vm1603_vm2  ;;  %p1536_p4 = scmp.lt.s32.totalorder %s1868_s14, %s1534_s22  ;;  %p1537_p10 = scmp.lt.s32.totalorder %s1535_s29, %s1529_s26 }
  0x44   : > { %1317 = vmatmul.mubr.msk.f32.vlgmr.msra.gmra.mrb[0].mxu1 %vm393_vm0, %v365_v19  ;;  %476 = vmatprep.mubr.f32.mxu0 %v1601_v0  ;;  %p1532_p13 = pneg %p1531_p12 }
  0x45   : > { %565 = vmatprep.mubr.f32.mxu1 %v1601_v0  ;;  %390 = vperm.xlu1 %1466, %v372_v22   ;;  %p1538_p1 = por %p1537_p10, %p1536_p4 }
  0x46   : > { %606 = vperm.xlu0 %1465, %v602_v24  }
  0x47   : > { %1314 = vmatmul.mubr.msk.f32.gmra.mrb[2].mxu0 %vm393_vm0, %v366_v23  ;;  %p1539_p3 = pnand %p1538_p1, %p1532_p13 }
  0x48   : > { %1318 = vmatmul.mubr.msk.f32.gmra.mrb[2].mxu1 %vm393_vm0, %v366_v23  ;;  %482 = vmatprep.mubr.f32.mxu0 %v1601_v0 }
  0x49   : > { %571 = vmatprep.mubr.f32.mxu1 %v1601_v0  ;;  %611 = vperm.xlu1 %1466, %v603_v25  }
  0x4a   : > { %802 = vperm.xlu0 %1465, %v798_v27  }
  0x4b   : > { %1315 = vmatmul.mubr.msk.f32.gmra.mrb[4].mxu0 %vm393_vm0, %v367_v26 }
  0x4c   : > { %1319 = vmatmul.mubr.msk.f32.gmra.mrb[4].mxu1 %vm393_vm0, %v367_v26  ;;  %488 = vmatprep.mubr.f32.mxu0 %v1601_v0 }
  0x4d   : > { %577 = vmatprep.mubr.f32.mxu1 %v1601_v0  ;;  %807 = vperm.xlu1 %1466, %v799_v28   ;;  %v600_v28 = vld [vmem:[%s1913_s3] sm:$0xff] }
  0x4e   : > { %1036 = vperm.xlu0 %1465, %v1033_v30  }
  0x4f   : > { %1316 = vmatmul.mubr.msk.f32.gmra.mrb[6].mxu0 %vm393_vm0, %v368_v29 }
  0x50   : > { %1320 = vmatmul.mubr.msk.f32.gmra.mrb[6].mxu1 %vm393_vm0, %v368_v29  ;;  %698 = vmatprep.mubr.f32.mxu0 %v1601_v0  ;;  %v601_v29 = vld [vmem:[%s1913_s3 + $0x8] sm:$0x7f] }
  0x51   : > { %775 = vmatprep.mubr.f32.mxu1 %v1601_v0 }
  0xbd   : > { %v376_v31 = vpop.permute.xlu0 %375 }
  0xbf   : > { %v386_v45 = vpop.permute.xlu1 %385 }
  0xc1   : > { %v381_v37 = vpop.permute.xlu0 %380 }
  0xc4   : > { %v391_v4 = vpop.permute.xlu1 %390 }
 0x116   : > { %v472_v32 = vpop.f32.mrb[0].mxu0 }
 0x117   : > { %v561_v33 = vpop.f32.mrb[0].mxu1  ;;  %v474_v34 = vpop.f32.mrb[1].mxu0  ;;  %v473_v36 = vadd.f32 %v472_v32, %v376_v31 }
 0x118   : > { %v563_v35 = vpop.f32.mrb[1].mxu1  ;;  %v562_v38 = vadd.f32 %v561_v33, %v376_v31  ;;  %v475_v39 = vadd.f32 %v474_v34, %v376_v31  ;;  %v607_v33 = vpop.permute.xlu0 %606 }
 0x119   : > { %v564_v41 = vadd.f32 %v563_v35, %v376_v31  ;;  %v584_v49 = vmax.f32 %v473_v36, 0.0  ;;  %v612_v36 = vpop.permute.xlu1 %611 }
 0x11a   : > { %v478_v40 = vpop.f32.mrb[2].mxu0  ;;  %v586_v52 = vmax.f32 %v562_v38, 0.0  ;;  %v585_v53 = vmax.f32 %v475_v39, 0.0 }
 0x11b   : > { %v479_v42 = vadd.f32 %v478_v40, %v381_v37  ;;  %v567_v43 = vpop.f32.mrb[2].mxu1  ;;  %v480_v44 = vpop.f32.mrb[3].mxu0  ;;  %v587_v57 = vmax.f32 %v564_v41, 0.0 }
 0x11c   : > { %v568_v46 = vadd.f32 %v567_v43, %v381_v37  ;;  %v481_v47 = vadd.f32 %v480_v44, %v381_v37  ;;  %v569_v48 = vpop.f32.mrb[3].mxu1 }
 0x11d   : > { %v588_v50 = vmax.f32 %v479_v42, 0.0  ;;  %v570_v51 = vadd.f32 %v569_v48, %v381_v37 }
 0x11e   : > { %v590_v54 = vmax.f32 %v568_v46, 0.0  ;;  %v589_v55 = vmax.f32 %v481_v47, 0.0  ;;  %v484_v56 = vpop.f32.mrb[4].mxu0 }
 0x11f   : > { %v1368_v58 = vpack.c.bf16 %v588_v50, %v584_v49  ;;  %v591_v59 = vmax.f32 %v570_v51, 0.0  ;;  %v573_v60 = vpop.f32.mrb[4].mxu1  ;;  %v486_v61 = vpop.f32.mrb[5].mxu0  ;;  %v485_v3 = vadd.f32 %v484_v56, %v386_v45 }
 0x120   : > { %v1378_v62 = vpack.c.bf16 %v590_v54, %v586_v52  ;;  %v1366_v63 = vpack.c.bf16 %v589_v55, %v585_v53  ;;  %v575_v1 = vpop.f32.mrb[5].mxu1  ;;  %v574_v5 = vadd.f32 %v573_v60, %v386_v45  ;;  %v487_v6 = vadd.f32 %v486_v61, %v386_v45  ;;  %v796_v60 = vld [vmem:[%s1915_s5] sm:$0xff]  ;;  %v797_v61 = vld [vmem:[%s1915_s5 + $0x8] sm:$0x3] }
 0x121   : > { %v1376_v2 = vpack.c.bf16 %v591_v59, %v587_v57  ;;  %v576_v8 = vadd.f32 %v575_v1, %v386_v45  ;;  %v592_v15 = vmax.f32 %v485_v3, 0.0 }
 0x122   : > { %v490_v7 = vpop.f32.mrb[6].mxu0  ;;  %1367 = vmatprep.subr.bf16.mxu0 %v1366_v63  ;;  %v594_v18 = vmax.f32 %v574_v5, 0.0  ;;  %v593_v19 = vmax.f32 %v487_v6, 0.0 }
 0x123   : > { %v491_v9 = vadd.f32 %v490_v7, %v391_v4  ;;  %v579_v10 = vpop.f32.mrb[6].mxu1  ;;  %1377 = vmatprep.subr.bf16.mxu1 %v1376_v2  ;;  %v492_v11 = vpop.f32.mrb[7].mxu0  ;;  %1369 = vmatpush1.bf16.msra.mxu0 %v1368_v58  ;;  %v595_v22 = vmax.f32 %v576_v8, 0.0 }
 0x124   : > { %v580_v12 = vadd.f32 %v579_v10, %v391_v4  ;;  %v493_v13 = vadd.f32 %v492_v11, %v391_v4  ;;  %v581_v14 = vpop.f32.mrb[7].mxu1  ;;  %1379 = vmatpush1.bf16.msra.mxu1 %v1378_v62  ;;  %v803_v62 = vpop.permute.xlu0 %802 }
 0x125   : > { %v596_v16 = vmax.f32 %v491_v9, 0.0  ;;  %v582_v17 = vadd.f32 %v581_v14, %v391_v4  ;;  %v808_v9 = vpop.permute.xlu1 %807 }
 0x126   : > { %v598_v20 = vmax.f32 %v580_v12, 0.0  ;;  %v597_v21 = vmax.f32 %v493_v13, 0.0 }
 0x127   : > { %v1373_v23 = vpack.c.bf16 %v596_v16, %v592_v15  ;;  %v599_v24 = vmax.f32 %v582_v17, 0.0 }
 0x128   : > { %v1383_v25 = vpack.c.bf16 %v598_v20, %v594_v18  ;;  %v1370_v26 = vpack.c.bf16 %v597_v21, %v593_v19 }
 0x129   : > { %v1380_v27 = vpack.c.bf16 %v599_v24, %v595_v22 }
 0x12a   : > { %1372 = vmatprep.subr.msk.bf16.mxu0 %vm1371_vm3, %v1370_v26 }
 0x12b   : > { %1382 = vmatprep.subr.msk.bf16.mxu1 %vm1371_vm3, %v1380_v27  ;;  %1375 = vmatpush1.bf16.msk.msra.mxu0 %vm1371_vm3, %v1373_v23 }
 0x12c   : > { %1385 = vmatpush1.bf16.msk.msra.mxu1 %vm1371_vm3, %v1383_v25 }
 0x12e   : > { %1323 = vmatmul.mubr.msk.f32.vlgmr.msra.gmra.mrb[8].mxu0 %vm614_vm4, %v600_v28 }
 0x12f   : > { %1327 = vmatmul.mubr.msk.f32.vlgmr.msra.gmra.mrb[8].mxu1 %vm614_vm4, %v600_v28  ;;  %704 = vmatprep.mubr.f32.mxu0 %v1601_v0 }
 0x130   : > { %781 = vmatprep.mubr.f32.mxu1 %v1601_v0 }
 0x132   : > { %1324 = vmatmul.mubr.msk.f32.gmra.mrb[10].mxu0 %vm614_vm4, %v601_v29 }
 0x133   : > { %1328 = vmatmul.mubr.msk.f32.gmra.mrb[10].mxu1 %vm614_vm4, %v601_v29  ;;  %894 = vmatprep.mubr.f32.mxu0 %v1601_v0 }
 0x134   : > { %971 = vmatprep.mubr.f32.mxu1 %v1601_v0 }
 0x201   : > { %v700_v30 = vpop.f32.mrb[8].mxu0 }
 0x202   : > { %v777_v31 = vpop.f32.mrb[8].mxu1  ;;  %v702_v32 = vpop.f32.mrb[9].mxu0  ;;  %v701_v35 = vadd.f32 %v700_v30, %v607_v33 }
 0x203   : > { %v779_v34 = vpop.f32.mrb[9].mxu1  ;;  %v778_v37 = vadd.f32 %v777_v31, %v607_v33  ;;  %v703_v38 = vadd.f32 %v702_v32, %v607_v33 }
 0x204   : > { %v780_v40 = vadd.f32 %v779_v34, %v607_v33  ;;  %v788_v47 = vmax.f32 %v701_v35, 0.0 }
 0x205   : > { %v706_v39 = vpop.f32.mrb[10].mxu0  ;;  %v790_v50 = vmax.f32 %v778_v37, 0.0  ;;  %v789_v51 = vmax.f32 %v703_v38, 0.0 }
 0x206   : > { %v707_v41 = vadd.f32 %v706_v39, %v612_v36  ;;  %v783_v42 = vpop.f32.mrb[10].mxu1  ;;  %v708_v43 = vpop.f32.mrb[11].mxu0  ;;  %v791_v54 = vmax.f32 %v780_v40, 0.0 }
 0x207   : > { %v784_v44 = vadd.f32 %v783_v42, %v612_v36  ;;  %v709_v45 = vadd.f32 %v708_v43, %v612_v36  ;;  %v785_v46 = vpop.f32.mrb[11].mxu1 }
 0x208   : > { %v792_v48 = vmax.f32 %v707_v41, 0.0  ;;  %v786_v49 = vadd.f32 %v785_v46, %v612_v36 }
 0x209   : > { %v794_v52 = vmax.f32 %v784_v44, 0.0  ;;  %v793_v53 = vmax.f32 %v709_v45, 0.0 }
 0x20a   : > { %v1389_v55 = vpack.c.bf16 %v792_v48, %v788_v47  ;;  %v795_v56 = vmax.f32 %v786_v49, 0.0 }
 0x20b   : > { %v1395_v57 = vpack.c.bf16 %v794_v52, %v790_v50  ;;  %v1386_v58 = vpack.c.bf16 %v793_v53, %v789_v51  ;;  %v1032_v52 = vld [vmem:[%s1917_s7] sm:$0x3]  ;;  %v1604_v53 = vmov 1983009808  }
 0x20c   : > { %v1392_v59 = vpack.c.bf16 %v795_v56, %v791_v54  ;;  %v1205_v54 = vunpack.c.l.s4 %v1604_v53 }
 0x20d   : > { %1388 = vmatprep.subr.msk.bf16.mxu0 %vm1387_vm6, %v1386_v58  ;;  %v1037_v58 = vpop.permute.xlu0 %1036 }
 0x20e   : > { %1394 = vmatprep.subr.msk.bf16.mxu1 %vm1387_vm6, %v1392_v59  ;;  %1391 = vmatpush1.bf16.msk.msra.mxu0 %vm1387_vm6, %v1389_v55  ;;  %v1207_v55 = vlaneseq  ;;  %v1206_v56 = vunpack.c.0.s8 %v1205_v54 }
 0x20f   : > { %1397 = vmatpush1.bf16.msk.msra.mxu1 %vm1387_vm6, %v1395_v57 }
 0x210   : > { %v1208_v57 = vshrl.u32 %v1207_v55, 7 }
 0x211   : > { %1331 = vmatmul.mubr.msk.f32.vlgmr.msra.gmra.mrb[12].mxu0 %vm810_vm7, %v796_v60 }
 0x212   : > { %1335 = vmatmul.mubr.msk.f32.vlgmr.msra.gmra.mrb[12].mxu1 %vm810_vm7, %v796_v60  ;;  %900 = vmatprep.mubr.f32.mxu0 %v1601_v0 }
 0x213   : > { %977 = vmatprep.mubr.f32.mxu1 %v1601_v0 }
 0x215   : > { %1332 = vmatmul.mubr.msk.f32.gmra.mrb[14].mxu0 %vm810_vm7, %v797_v61 }
 0x216   : > { %1336 = vmatmul.mubr.msk.f32.gmra.mrb[14].mxu1 %vm810_vm7, %v797_v61  ;;  %1120 = vmatprep.mubr.f32.mxu0 %v1601_v0 }
 0x217   : > { %1191 = vmatprep.mubr.f32.mxu1 %v1601_v0 }
 0x2e4   : > { %v896_v63 = vpop.f32.mrb[12].mxu0 }
 0x2e5   : > { %v897_v1 = vadd.f32 %v896_v63, %v803_v62  ;;  %v973_v2 = vpop.f32.mrb[12].mxu1  ;;  %v898_v3 = vpop.f32.mrb[13].mxu0 }
 0x2e6   : > { %v974_v4 = vadd.f32 %v973_v2, %v803_v62  ;;  %v899_v5 = vadd.f32 %v898_v3, %v803_v62  ;;  %v975_v6 = vpop.f32.mrb[13].mxu1  ;;  %v1209_v2 = vsub.s32 %v1206_v56, %v1208_v57 }
 0x2e7   : > { %v1337_v7 = vmul.f32 -1.442695, %v897_v1  ;;  %v976_v8 = vadd.f32 %v975_v6, %v803_v62 }
 0x2e8   : > { %v1339_v10 = vmul.f32 -1.442695, %v974_v4  ;;  %v1338_v11 = vmul.f32 -1.442695, %v899_v5  ;;  %v902_v12 = vpop.f32.mrb[14].mxu0 }
 0x2e9   : > { %1467 = vpow2.f32 %v1337_v7  ;;  %v1340_v13 = vmul.f32 -1.442695, %v976_v8  ;;  %v903_v14 = vadd.f32 %v902_v12, %v808_v9  ;;  %v979_v15 = vpop.f32.mrb[14].mxu1  ;;  %v904_v16 = vpop.f32.mrb[15].mxu0 }
 0x2ea   : > { %1469 = vpow2.f32 %v1339_v10  ;;  %v980_v0 = vadd.f32 %v979_v15, %v808_v9  ;;  %v905_v17 = vadd.f32 %v904_v16, %v808_v9  ;;  %v981_v18 = vpop.f32.mrb[15].mxu1 }
 0x2eb   : > { %1471 = vpow2.f32 %v1338_v11  ;;  %v1341_v19 = vmul.f32 -1.442695, %v903_v14  ;;  %v982_v20 = vadd.f32 %v981_v18, %v808_v9 }
 0x2ec   : > { %1473 = vpow2.f32 %v1340_v13  ;;  %v1343_v21 = vmul.f32 -1.442695, %v980_v0  ;;  %v1342_v22 = vmul.f32 -1.442695, %v905_v17 }
 0x2ed   : > { %1475 = vpow2.f32 %v1341_v19  ;;  %v1344_v23 = vmul.f32 -1.442695, %v982_v20 }
 0x2ee   : > { %1477 = vpow2.f32 %v1343_v21 }
 0x2ef   : > { %1479 = vpow2.f32 %v1342_v22 }
 0x2f0   : > { %1481 = vpow2.f32 %v1344_v23 }
 0x2f3   : > { %v1468_v24 = vpop.eup %1467 }
 0x2f4   : > { %v1470_v25 = vpop.eup %1469  ;;  %v1008_v26 = vadd.f32 1.0, %v1468_v24 }
 0x2f5   : > { %v1472_v27 = vpop.eup %1471  ;;  %v1010_v28 = vadd.f32 1.0, %v1470_v25 }
 0x2f6   : > { %v1474_v29 = vpop.eup %1473  ;;  %1483 = vrcp.f32 %v1008_v26  ;;  %v1009_v30 = vadd.f32 1.0, %v1472_v27 }
 0x2f7   : > { %v1476_v31 = vpop.eup %1475  ;;  %1485 = vrcp.f32 %v1010_v28  ;;  %v1011_v32 = vadd.f32 1.0, %v1474_v29 }
 0x2f8   : > { %v1478_v33 = vpop.eup %1477  ;;  %1487 = vrcp.f32 %v1009_v30  ;;  %v1012_v34 = vadd.f32 1.0, %v1476_v31 }
 0x2f9   : > { %v1480_v35 = vpop.eup %1479  ;;  %1489 = vrcp.f32 %v1011_v32  ;;  %v1014_v36 = vadd.f32 1.0, %v1478_v33 }
 0x2fa   : > { %v1482_v37 = vpop.eup %1481  ;;  %1491 = vrcp.f32 %v1012_v34  ;;  %v1013_v38 = vadd.f32 1.0, %v1480_v35 }
 0x2fb   : > { %1493 = vrcp.f32 %v1014_v36  ;;  %v1015_v39 = vadd.f32 1.0, %v1482_v37 }
 0x2fc   : > { %1495 = vrcp.f32 %v1013_v38 }
 0x2fd   : > { %1497 = vrcp.f32 %v1015_v39 }
 0x300   : > { %v1484_v40 = vpop.eup %1483 }
 0x301   : > { %v1486_v41 = vpop.eup %1485 }
 0x302   : > { %v1488_v42 = vpop.eup %1487 }
 0x303   : > { %v1490_v43 = vpop.eup %1489 }
 0x304   : > { %v1492_v44 = vpop.eup %1491 }
 0x305   : > { %v1494_v45 = vpop.eup %1493  ;;  %v1401_v46 = vpack.c.bf16 %v1492_v44, %v1484_v40 }
 0x306   : > { %v1496_v47 = vpop.eup %1495  ;;  %v1407_v48 = vpack.c.bf16 %v1494_v45, %v1486_v41 }
 0x307   : > { %v1498_v49 = vpop.eup %1497  ;;  %v1398_v50 = vpack.c.bf16 %v1496_v47, %v1488_v42 }
 0x308   : > { %v1404_v51 = vpack.c.bf16 %v1498_v49, %v1490_v43 }
 0x309   : > { %1400 = vmatprep.subr.msk.bf16.mxu0 %vm1399_vm9, %v1398_v50 }
 0x30a   : > { %1406 = vmatprep.subr.msk.bf16.mxu1 %vm1399_vm9, %v1404_v51  ;;  %1403 = vmatpush1.bf16.msk.msra.mxu0 %vm1399_vm9, %v1401_v46 }
 0x30b   : > { %1409 = vmatpush1.bf16.msk.msra.mxu1 %vm1399_vm9, %v1407_v48 }
 0x30d   : > { %1347 = vmatmul.mubr.msk.f32.vlgmr.msra.gmra.mrb[16].mxu0 %vm1039_vm10, %v1032_v52 }
 0x30e   : > { %1350 = vmatmul.mubr.msk.f32.vlgmr.msra.gmra.mrb[16].mxu1 %vm1039_vm10, %v1032_v52 }
 0x3e0   : > { %v1122_v59 = vpop.f32.mrb[16].mxu0 }
 0x3e1   : > { %v1123_v60 = vadd.f32 %v1122_v59, %v1037_v58  ;;  %v1193_v61 = vpop.f32.mrb[16].mxu1  ;;  %v1124_v62 = vpop.f32.mrb[17].mxu0 }
 0x3e2   : > { %v1194_v63 = vadd.f32 %v1193_v61, %v1037_v58  ;;  %v1125_v1 = vadd.f32 %v1124_v62, %v1037_v58  ;;  %v1195_v3 = vpop.f32.mrb[17].mxu1 }
 0x3e3   : > { %v1196_v4 = vadd.f32 %v1195_v3, %v1037_v58 }
 0x3e4   : > { %v1202_v5 = vcombine.low %v1123_v60, %v1125_v1 }
 0x3e5   : > { %v1203_v6 = vcombine.low %v1194_v63, %v1196_v4 }
 0x3e6   : > { %v1210_v7 = vrot.slane %v1202_v5, %v1209_v2 }
 0x3e7   : > { %v1217_v8 = vrot.slane %v1203_v6, %v1209_v2 }
 0x3e9   : > { %v1218_v9 = vcombine.low %v1210_v7, %v1217_v8 }
 0x3eb   : > { %1220 = vst [vmem:[%s350_s28] sm:$0xff] %v1218_v9 }
 0x3ec   : > { %1542 = shalt.err (!%p1539_p3)
}
 0x3ed   : > { %s1543_s24 = scalar_lea.hbm %s1866_s17, 128  ;;  %s1547_s27 = scalar_lea.hbm %s1919_s9, 256 }
 0x3ee   : > { %p1544_p5 = scmp.ne.s32.totalorder %s1866_s17, %s1543_s24  ;;  %p1548_p9 = scmp.lt.u32.totalorder %s1866_s17, %s1919_s9 }
 0x3ef   : > { %p1549_p0 = scmp.lt.u32.totalorder %s1547_s27, %s1543_s24  ;;  %p1551_p6 = scmp.lt.u32.totalorder %s1543_s24, %s1866_s17 }
 0x3f0   : > { %p1545_p7 = pnand %p1544_p5, %p1927_p11 }
 0x3f1   : > { %p1550_p2 = por %p1549_p0, %p1548_p9 }
 0x3f2   : > { %p1546_p8 = pneg %p1545_p7 }
 0x3f3   : > { %p1552_p12 = por %p1551_p6, %p1550_p2 }
 0x3f5   : > { %p1553_p13 = pnand %p1552_p12, %p1546_p8 }
 0x3f7   : > { %1556 = shalt.err (!%p1553_p13)
}
 0x3f8   : > { %1414 = dma.vmem_to_hbm [thread:$0]  (%p1927_p11), %s1868_s14, 128, %s1866_s17, %s1222_s25  }
 0x3f9 PF: > { %s1248_s18 = sand.u32 1, %s1583_s30   ;;  %p1928_p4 = scmp.ne.s32.totalorder %s1924_s21, 0 }
 0x3fa   : > { %p1929_p10 = scmp.ge.s32.totalorder %s1595_s12, 2  ;;  %s1249_s26 = scalar_lea.sflag [#allocation4], %s1248_s18 }
 0x3fc   : > { %p1421_p1 = pnand %p1929_p10, %p1928_p4 }
 0x3fe   : > { %1578 = dma.done.wait (!%p1421_p1), %s1249_s26, 128  }
 0x3ff   : > { %1580 = vsyncadd (!%p1421_p1), %s1249_s26, 4294967168  ;;  %s1930_s13 = sld [smem:[#allocation8_spill]]  ;;  %p22_p3 = scmp.ge.s32.totalorder %s1681_s15, 4  }
 0x400   : > { %s1931_s30 = smov %s1587_s10  ;;  %s1932_s10 = smov %s1591_s11 }
 0x401   : > { %s1934_s12 = smov %s1681_s15  ;;  %24 = sbr.rel (!%p22_p3) target bundleno = 5 (0x5), region = 101 }
 0x405   : > { %s1933_s11 = smov %s1930_s13 }
 0x408   :  { %1254 = vsyncpa [#allocation3], 1 }
 0x409   :  { %1256 = vsyncpa [#allocation3 + $0x1], 1 }
 0x40a   :  { %1257 = vsyncpa [#allocation4], 1 }
 0x40b   :  { %1259 = vsyncpa [#allocation4 + $0x1], 1 }

</bundles_post_ra>
